<compile_context>
chip_gen: v7x
topology: tpu7x:2x2x1
jax: 0.10.0
libtpu: 0.0.40
codegen_flags: <defaults>
</compile_context>

<pallas_src>
import functools
import math

import jax
import jax.numpy as jnp
from jax import lax
from jax.experimental import pallas as pl
from jax.experimental.pallas import tpu as pltpu

MXU_DTYPE = jnp.bfloat16              # MXU operand dtype (f32 accumulate everywhere)
VMEM_LIMIT_BYTES = 32 * 1024 * 1024   # safe on v5e/v6e (128 MiB) and v7x (64 MiB physical)


# --------------------------------------------------------------------------------------
# Tiling helper: largest tile <= cap that divides dim (aligned when not the full extent).
# Caps chosen so (inputs + output + f32 accumulator) x 2 double-buffers stays well below
# the 32 MiB scoped budget (v7x: 64 MiB physical).  Re-derive before enlarging for v7x.
# --------------------------------------------------------------------------------------
def _pick_tile(dim, cap, align):
    if dim <= cap:
        return dim
    t = (cap // align) * align
    while t >= align:
        if dim % t == 0:
            return t
        t -= align
    return dim  # cannot tile cleanly -> fall back to full extent


def _cparams(semantics):
    return pltpu.CompilerParams(dimension_semantics=semantics,
                                vmem_limit_bytes=VMEM_LIMIT_BYTES)


# --------------------------------------------------------------------------------------
# Fused LayerNorm + Linear kernel:  y = act( LN(x) @ W + b )
# x block is (tm, D) with the FULL contraction dim so LN can be computed in-prologue.
# LN uses torch semantics: unbiased (n-1) variance, divide by (std + eps).
# --------------------------------------------------------------------------------------
def _ln_linear_kernel(x_ref, g_ref, b2_ref, w_ref, b_ref, o_ref, *,
                      eps, d, activation, mxu_dtype):
    x = x_ref[...].astype(jnp.float32)                                  # (tm, D)
    mean = jnp.mean(x, axis=-1, keepdims=True)
    xc = x - mean
    var = jnp.sum(xc * xc, axis=-1, keepdims=True) * (1.0 / (d - 1))    # torch .std() unbiased
    inv = pl.reciprocal(jnp.sqrt(var) + eps, approx=True)               # EUP, not VALU divide
    xn = g_ref[...].astype(jnp.float32) * (xc * inv) + b2_ref[...].astype(jnp.float32)

    y = jnp.dot(xn.astype(mxu_dtype), w_ref[...],
                preferred_element_type=jnp.float32)                     # MXU bf16, f32 acc
    y = y + b_ref[...].astype(jnp.float32)
    if activation == "relu":
        y = jnp.maximum(y, 0.0)
    o_ref[...] = y.astype(o_ref.dtype)


def ln_linear(x2d, gamma, beta, w, b, *, eps=1e-6, activation=None,
              mxu_dtype=MXU_DTYPE, tm_cap=256, tn_cap=512):
    m, d = x2d.shape
    n = w.shape[1]
    tm = _pick_tile(m, tm_cap, 8)
    tn = _pick_tile(n, tn_cap, 128)
    grid = (m // tm, n // tn)
    return pl.pallas_call(
        functools.partial(_ln_linear_kernel, eps=eps, d=d,
                          activation=activation, mxu_dtype=mxu_dtype),
        out_shape=jax.ShapeDtypeStruct((m, n), x2d.dtype),
        grid=grid,
        in_specs=[
            pl.BlockSpec((tm, d), lambda i, j: (i, 0)),    # x tile resident across n tiles
            pl.BlockSpec((1, d), lambda i, j: (0, 0)),     # gamma resident
            pl.BlockSpec((1, d), lambda i, j: (0, 0)),     # beta resident
            pl.BlockSpec((d, tn), lambda i, j: (0, j)),    # weight (bf16) tile
            pl.BlockSpec((1, tn), lambda i, j: (0, j)),    # bias tile
        ],
        out_specs=pl.BlockSpec((tm, tn), lambda i, j: (i, j)),
        compiler_params=_cparams(("parallel", "parallel")),
    )(x2d, gamma.reshape(1, d), beta.reshape(1, d), w.astype(mxu_dtype), b.reshape(1, n))


# --------------------------------------------------------------------------------------
# Plain tiled matmul: y = x @ w + b  (optionally + residual).  Reduction axis last,
# f32 accumulator in VMEM scratch, bias/residual fused into the epilogue.
# --------------------------------------------------------------------------------------
def _linear_kernel(x_ref, w_ref, b_ref, o_ref, acc_ref):
    @pl.when(pl.program_id(2) == 0)
    def _():
        acc_ref[...] = jnp.zeros_like(acc_ref)

    acc_ref[...] += jnp.dot(x_ref[...].astype(w_ref.dtype), w_ref[...],
                            preferred_element_type=jnp.float32)

    @pl.when(pl.program_id(2) == pl.num_programs(2) - 1)
    def _():
        y = acc_ref[...] + b_ref[...].astype(jnp.float32)
        o_ref[...] = y.astype(o_ref.dtype)


def _linear_residual_kernel(x_ref, w_ref, b_ref, r_ref, o_ref, acc_ref):
    @pl.when(pl.program_id(2) == 0)
    def _():
        acc_ref[...] = jnp.zeros_like(acc_ref)

    acc_ref[...] += jnp.dot(x_ref[...].astype(w_ref.dtype), w_ref[...],
                            preferred_element_type=jnp.float32)

    @pl.when(pl.program_id(2) == pl.num_programs(2) - 1)
    def _():
        y = acc_ref[...] + b_ref[...].astype(jnp.float32) + r_ref[...].astype(jnp.float32)
        o_ref[...] = y.astype(o_ref.dtype)


def linear(x2d, w, b, *, residual=None, mxu_dtype=MXU_DTYPE,
           tm_cap=256, tn_cap=512, tk_cap=512):
    m, k = x2d.shape
    k2, n = w.shape
    assert k == k2
    tm = _pick_tile(m, tm_cap, 8)
    tn = _pick_tile(n, tn_cap, 128)
    tk = _pick_tile(k, tk_cap, 128)
    grid = (m // tm, n // tn, k // tk)

    in_specs = [
        pl.BlockSpec((tm, tk), lambda i, j, kk: (i, kk)),
        pl.BlockSpec((tk, tn), lambda i, j, kk: (kk, j)),
        pl.BlockSpec((1, tn), lambda i, j, kk: (0, j)),
    ]
    args = [x2d, w.astype(mxu_dtype), b.reshape(1, n)]
    if residual is not None:
        in_specs.append(pl.BlockSpec((tm, tn), lambda i, j, kk: (i, j)))
        args.append(residual)
        kernel = _linear_residual_kernel
    else:
        kernel = _linear_kernel

    return pl.pallas_call(
        kernel,
        out_shape=jax.ShapeDtypeStruct((m, n), x2d.dtype),
        grid=grid,
        in_specs=in_specs,
        out_specs=pl.BlockSpec((tm, tn), lambda i, j, kk: (i, j)),
        scratch_shapes=[pltpu.VMEM((tm, tn), jnp.float32)],
        compiler_params=_cparams(("parallel", "parallel", "arbitrary")),
    )(*args)


# --------------------------------------------------------------------------------------
# Multi-head attention: one grid step per batch element, all H heads processed in-kernel
# (unrolled head loop with static column slices), merged lane-dense (T, D) output.
# Q/K/V are read directly from the fused projection outputs via column-block index_maps.
# Mask tile is (1, T, S) and stays VMEM-resident across the batch grid.
# --------------------------------------------------------------------------------------
def _attention_kernel(q_ref, k_ref, v_ref, m_ref, o_ref, *, H, dk, scale, mxu_dtype):
    q = q_ref[0].astype(mxu_dtype)            # (T, D)  MXU operands
    k = k_ref[0].astype(mxu_dtype)            # (S, D)
    v = v_ref[0].astype(mxu_dtype)            # (S, D)
    mask_zero = m_ref[0] == 0.0               # (T, S) bool, shared by all heads

    outs = []
    for hh in range(H):                       # static unroll over heads
        sl = slice(hh * dk, (hh + 1) * dk)
        # Q.K^T via dot_general contracting the last dims -> no explicit K transpose.
        s = lax.dot_general(q[:, sl], k[:, sl], (((1,), (1,)), ((), ())),
                            preferred_element_type=jnp.float32) * scale   # (T, S) f32
        s = jnp.where(mask_zero, jnp.float32(-1e9), s)
        s = s - jnp.max(s, axis=-1, keepdims=True)
        p = jnp.exp(s)
        p = p * pl.reciprocal(jnp.sum(p, axis=-1, keepdims=True), approx=True)  # EUP recip
        outs.append(lax.dot_general(p.astype(mxu_dtype), v[:, sl],
                                    (((1,), (0,)), ((), ())),
                                    preferred_element_type=jnp.float32))        # (T, dk)
    o_ref[0] = jnp.concatenate(outs, axis=-1).astype(o_ref.dtype)               # (T, D) lane-dense


def multi_head_attention(q_src, kv_src, mask, *, d_model, h, scale,
                         q_col, k_col, v_col, mxu_dtype=MXU_DTYPE):
    B, T, _ = q_src.shape
    S = kv_src.shape[1]
    dk = d_model // h

    if mask.shape[0] == 1:
        mask_map = lambda b: (0, 0, 0)        # same mask tile for every batch step
    else:
        mask_map = lambda b: (b, 0, 0)

    return pl.pallas_call(
        functools.partial(_attention_kernel, H=h, dk=dk, scale=scale, mxu_dtype=mxu_dtype),
        out_shape=jax.ShapeDtypeStruct((B, T, d_model), q_src.dtype),
        grid=(B,),
        in_specs=[
            pl.BlockSpec((1, T, d_model), lambda b: (b, 0, q_col)),   # Q columns of q_src
            pl.BlockSpec((1, S, d_model), lambda b: (b, 0, k_col)),   # K columns of kv_src
            pl.BlockSpec((1, S, d_model), lambda b: (b, 0, v_col)),   # V columns of kv_src
            pl.BlockSpec((1, T, S), mask_map),
        ],
        out_specs=pl.BlockSpec((1, T, d_model), lambda b: (b, 0, 0)),
        compiler_params=_cparams(("parallel",)),
    )(q_src, kv_src, kv_src, mask)


# --------------------------------------------------------------------------------------
# DecoderLayer forward (Pallas) and pure-JAX reference
# --------------------------------------------------------------------------------------
def decoder_layer_forward(p, x, memory, src_mask, tgt_mask, *, h, mxu_dtype=MXU_DTYPE):
    B, T, D = x.shape
    S = memory.shape[1]
    dk = D // h
    scale = 1.0 / math.sqrt(dk)

    x2 = x.reshape(B * T, D)                                  # free reshapes (row-major)
    m2 = memory.reshape(B * S, D)
    tgt_m = jnp.broadcast_to(tgt_mask, (tgt_mask.shape[0], T, T)).astype(jnp.float32)
    src_m = jnp.broadcast_to(src_mask, (src_mask.shape[0], T, S)).astype(jnp.float32)

    # ---- sublayer 0: masked self-attention (LN0 fused into QKV projection) ----
    qkv = ln_linear(x2, p["ln0_g"], p["ln0_b"], p["sa_wqkv"], p["sa_bqkv"],
                    mxu_dtype=mxu_dtype)                      # (B*T, 3D)
    qkv3 = qkv.reshape(B, T, 3 * D)
    a = multi_head_attention(qkv3, qkv3, tgt_m, d_model=D, h=h, scale=scale,
                             q_col=0, k_col=1, v_col=2, mxu_dtype=mxu_dtype)
    x2 = linear(a.reshape(B * T, D), p["sa_wo"], p["sa_bo"], residual=x2,
                mxu_dtype=mxu_dtype)                          # out-proj + residual fused

    # ---- sublayer 1: source attention over memory (LN1 fused into Q projection) ----
    q = ln_linear(x2, p["ln1_g"], p["ln1_b"], p["ca_wq"], p["ca_bq"],
                  mxu_dtype=mxu_dtype)                        # (B*T, D)
    kvm = linear(m2, p["ca_wkv"], p["ca_bkv"], mxu_dtype=mxu_dtype)   # (B*S, 2D), no LN
    a = multi_head_attention(q.reshape(B, T, D), kvm.reshape(B, S, 2 * D), src_m,
                             d_model=D, h=h, scale=scale,
                             q_col=0, k_col=0, v_col=1, mxu_dtype=mxu_dtype)
    x2 = linear(a.reshape(B * T, D), p["ca_wo"], p["ca_bo"], residual=x2,
                mxu_dtype=mxu_dtype)

    # ---- sublayer 2: position-wise feed-forward (LN2 + relu fused into FF1) ----
    hdn = ln_linear(x2, p["ln2_g"], p["ln2_b"], p["ff_w1"], p["ff_b1"],
                    activation="relu", mxu_dtype=mxu_dtype)
    x2 = linear(hdn, p["ff_w2"], p["ff_b2"], residual=x2, mxu_dtype=mxu_dtype)

    return x2.reshape(B, T, D)


def decoder_layer_reference(p, x, memory, src_mask, tgt_mask, *, h):
    B, T, D = x.shape
    S = memory.shape[1]
    dk = D // h
    scale = 1.0 / math.sqrt(dk)

    def ln(x, g, b, eps=1e-6):
        mean = x.mean(-1, keepdims=True)
        var = ((x - mean) ** 2).sum(-1, keepdims=True) / (D - 1)
        return g * (x - mean) / (jnp.sqrt(var) + eps) + b

    def split_heads(t):
        return t.reshape(t.shape[0], t.shape[1], h, dk).transpose(0, 2, 1, 3)

    def merge_heads(t):
        return t.transpose(0, 2, 1, 3).reshape(t.shape[0], -1, D)

    def attn(q, k, v, mask):
        s = jnp.einsum("bhtd,bhsd->bhts", q, k) * scale
        s = jnp.where(mask[:, None] == 0, -1e9, s)
        return jnp.einsum("bhts,bhsd->bhtd", jax.nn.softmax(s, axis=-1), v)

    tgt_m = jnp.broadcast_to(tgt_mask, (B, T, T))
    src_m = jnp.broadcast_to(src_mask, (B, T, S))

    xn = ln(x, p["ln0_g"], p["ln0_b"])
    wq, wk, wv = jnp.split(p["sa_wqkv"], 3, axis=1)
    bq, bk, bv = jnp.split(p["sa_bqkv"], 3)
    a = merge_heads(attn(split_heads(xn @ wq + bq), split_heads(xn @ wk + bk),
                         split_heads(xn @ wv + bv), tgt_m))
    x = x + (a @ p["sa_wo"] + p["sa_bo"])

    xn = ln(x, p["ln1_g"], p["ln1_b"])
    wk, wv = jnp.split(p["ca_wkv"], 2, axis=1)
    bk, bv = jnp.split(p["ca_bkv"], 2)
    a = merge_heads(attn(split_heads(xn @ p["ca_wq"] + p["ca_bq"]),
                         split_heads(memory @ wk + bk),
                         split_heads(memory @ wv + bv), src_m))
    x = x + (a @ p["ca_wo"] + p["ca_bo"])

    xn = ln(x, p["ln2_g"], p["ln2_b"])
    hdn = jnp.maximum(xn @ p["ff_w1"] + p["ff_b1"], 0.0)
    return x + (hdn @ p["ff_w2"] + p["ff_b2"])


def init_decoder_layer_params(key, d_model, d_ff, dtype=jnp.float32):
    D = d_model
    keys = jax.random.split(key, 14)

    def w(k, shape, scale=0.05):
        return (scale * jax.random.normal(k, shape)).astype(dtype)

    return {
        "sa_wqkv": w(keys[0], (D, 3 * D)), "sa_bqkv": w(keys[1], (3 * D,)),
        "sa_wo": w(keys[2], (D, D)), "sa_bo": w(keys[3], (D,)),
        "ca_wq": w(keys[4], (D, D)), "ca_bq": w(keys[5], (D,)),
        "ca_wkv": w(keys[6], (D, 2 * D)), "ca_bkv": w(keys[7], (2 * D,)),
        "ca_wo": w(keys[8], (D, D)), "ca_bo": w(keys[9], (D,)),
        "ff_w1": w(keys[10], (D, d_ff)), "ff_b1": w(keys[11], (d_ff,)),
        "ff_w2": w(keys[12], (d_ff, D)), "ff_b2": w(keys[13], (D,)),
        "ln0_g": jnp.ones((D,), dtype), "ln0_b": jnp.zeros((D,), dtype),
        "ln1_g": jnp.ones((D,), dtype), "ln1_b": jnp.zeros((D,), dtype),
        "ln2_g": jnp.ones((D,), dtype), "ln2_b": jnp.zeros((D,), dtype),
    }


if __name__ == "__main__":
    B, T, S, D, H, DFF = 2, 8, 10, 128, 4, 256   # S=10 matches src_mask = ones(1,1,10)

    key = jax.random.PRNGKey(0)
    kx, km, kp = jax.random.split(key, 3)
    x = jax.random.normal(kx, (B, T, D), dtype=jnp.float32)
    memory = jax.random.normal(km, (B, S, D), dtype=jnp.float32)
    src_mask = jnp.ones((1, 1, S), dtype=jnp.float32)
    tgt_mask = jnp.tril(jnp.ones((T, T), dtype=jnp.float32))[None]     # subsequent mask (1,T,T)

    params = init_decoder_layer_params(kp, D, DFF)

    y = decoder_layer_forward(params, x, memory, src_mask, tgt_mask, h=H)
    jax.block_until_ready(y)
    assert y.shape == (B, T, D) and y.dtype == x.dtype

    y_ref = decoder_layer_reference(params, x, memory, src_mask, tgt_mask, h=H)
    assert jnp.allclose(y, y_ref, atol=2e-2, rtol=2e-2), "DecoderLayer mismatch vs reference"

    print("KERNEL_OK")
</pallas_src>

<mosaic_0001>
module attributes {stable_mosaic.version = 11 : i64} {
  func.func @_ln_linear_kernel(%arg0: i32, %arg1: i32, %arg2: memref<16x128xf32, #tpu.memory_space<vmem>>, %arg3: memref<1x128xf32, #tpu.memory_space<vmem>>, %arg4: memref<1x128xf32, #tpu.memory_space<vmem>>, %arg5: memref<128x384xbf16, #tpu.memory_space<vmem>>, %arg6: memref<1x384xf32, #tpu.memory_space<vmem>>, %arg7: memref<16x384xf32, #tpu.memory_space<vmem>>) attributes {dimension_semantics = [#tpu.dimension_semantics<parallel>, #tpu.dimension_semantics<parallel>], iteration_bounds = array<i64: 1, 1>, scalar_prefetch = 0 : i64, scratch_operands = 0 : i64, tpu.core_type = #tpu.core_type<tc>, window_params = [{transform_indices = @transform_0, window_bounds = array<i64: 16, 128>}, {pipeline_mode = #tpu.pipeline_mode<synchronous>, transform_indices = @transform_1, window_bounds = array<i64: 1, 128>}, {pipeline_mode = #tpu.pipeline_mode<synchronous>, transform_indices = @transform_2, window_bounds = array<i64: 1, 128>}, {transform_indices = @transform_3, window_bounds = array<i64: 128, 384>}, {transform_indices = @transform_4, window_bounds = array<i64: 1, 384>}, {transform_indices = @transform_5, window_bounds = array<i64: 16, 384>}]} {
    %c0 = arith.constant 0 : index
    %c0_0 = arith.constant 0 : index
    %0 = vector.load %arg2[%c0, %c0_0] : memref<16x128xf32, #tpu.memory_space<vmem>>, vector<16x128xf32>
    %cst = arith.constant dense<0.000000e+00> : vector<16xf32>
    %1 = vector.multi_reduction <add>, %0, %cst [1] : vector<16x128xf32> to vector<16xf32>
    %2 = vector.shape_cast %1 : vector<16xf32> to vector<16x1xf32>
    %cst_1 = arith.constant 1.280000e+02 : f32
    %3 = vector.broadcast %cst_1 : f32 to vector<16x1xf32>
    %4 = arith.divf %2, %3 : vector<16x1xf32>
    %5 = vector.broadcast %4 : vector<16x1xf32> to vector<16x128xf32>
    %6 = arith.subf %0, %5 : vector<16x128xf32>
    %7 = arith.mulf %6, %6 : vector<16x128xf32>
    %cst_2 = arith.constant dense<0.000000e+00> : vector<16xf32>
    %8 = vector.multi_reduction <add>, %7, %cst_2 [1] : vector<16x128xf32> to vector<16xf32>
    %9 = vector.shape_cast %8 : vector<16xf32> to vector<16x1xf32>
    %cst_3 = arith.constant 0.00787401571 : f32
    %10 = vector.broadcast %cst_3 : f32 to vector<16x1xf32>
    %11 = arith.mulf %9, %10 : vector<16x1xf32>
    %12 = math.sqrt %11 : vector<16x1xf32>
    %cst_4 = arith.constant 9.99999997E-7 : f32
    %13 = vector.broadcast %cst_4 : f32 to vector<16x1xf32>
    %14 = arith.addf %12, %13 : vector<16x1xf32>
    %15 = tpu.reciprocal %14 {approx = true} : vector<16x1xf32> -> vector<16x1xf32>
    %c0_5 = arith.constant 0 : index
    %c0_6 = arith.constant 0 : index
    %16 = vector.load %arg3[%c0_5, %c0_6] : memref<1x128xf32, #tpu.memory_space<vmem>>, vector<1x128xf32>
    %17 = vector.broadcast %15 : vector<16x1xf32> to vector<16x128xf32>
    %18 = arith.mulf %6, %17 : vector<16x128xf32>
    %19 = vector.broadcast %16 : vector<1x128xf32> to vector<16x128xf32>
    %20 = arith.mulf %19, %18 : vector<16x128xf32>
    %c0_7 = arith.constant 0 : index
    %c0_8 = arith.constant 0 : index
    %21 = vector.load %arg4[%c0_7, %c0_8] : memref<1x128xf32, #tpu.memory_space<vmem>>, vector<1x128xf32>
    %22 = vector.broadcast %21 : vector<1x128xf32> to vector<16x128xf32>
    %23 = arith.addf %20, %22 : vector<16x128xf32>
    %24 = arith.truncf %23 : vector<16x128xf32> to vector<16x128xbf16>
    %c0_9 = arith.constant 0 : index
    %c0_10 = arith.constant 0 : index
    %25 = vector.load %arg5[%c0_9, %c0_10] : memref<128x384xbf16, #tpu.memory_space<vmem>>, vector<128x384xbf16>
    %cst_11 = arith.constant dense<0.000000e+00> : vector<16x384xf32>
    %26 = tpu.matmul %24, %25, %cst_11 {dimension_numbers = #tpu.dot_dimension_numbers<[1], [0], [0], [1], [0, 0, 1, 1], [], []>} : vector<16x128xbf16>, vector<128x384xbf16>, vector<16x384xf32> -> vector<16x384xf32>
    %c0_12 = arith.constant 0 : index
    %c0_13 = arith.constant 0 : index
    %27 = vector.load %arg6[%c0_12, %c0_13] : memref<1x384xf32, #tpu.memory_space<vmem>>, vector<1x384xf32>
    %28 = vector.broadcast %27 : vector<1x384xf32> to vector<16x384xf32>
    %29 = arith.addf %26, %28 : vector<16x384xf32>
    %c0_14 = arith.constant 0 : index
    %c0_15 = arith.constant 0 : index
    %30 = vector.load %arg7[%c0_14, %c0_15] : memref<16x384xf32, #tpu.memory_space<vmem>>, vector<16x384xf32>
    tpu.vector_store %arg7[%c0_14, %c0_15], %29 {strides = array<i32>} : memref<16x384xf32, #tpu.memory_space<vmem>>, vector<16x384xf32>,
    return
  }
  func.func @transform_0(%arg0: i32, %arg1: i32) -> (i32, i32) {
    %c0_i32 = arith.constant 0 : i32
    %c0_i32_0 = arith.constant 0 : i32
    return %arg0, %c0_i32 : i32, i32
  }
  func.func @transform_1(%arg0: i32, %arg1: i32) -> (i32, i32) {
    %c0_i32 = arith.constant 0 : i32
    %c0_i32_0 = arith.constant 0 : i32
    %c0_i32_1 = arith.constant 0 : i32
    return %c0_i32, %c0_i32_0 : i32, i32
  }
  func.func @transform_2(%arg0: i32, %arg1: i32) -> (i32, i32) {
    %c0_i32 = arith.constant 0 : i32
    %c0_i32_0 = arith.constant 0 : i32
    %c0_i32_1 = arith.constant 0 : i32
    return %c0_i32, %c0_i32_0 : i32, i32
  }
  func.func @transform_3(%arg0: i32, %arg1: i32) -> (i32, i32) {
    %c0_i32 = arith.constant 0 : i32
    %c0_i32_0 = arith.constant 0 : i32
    return %c0_i32, %arg1 : i32, i32
  }
  func.func @transform_4(%arg0: i32, %arg1: i32) -> (i32, i32) {
    %c0_i32 = arith.constant 0 : i32
    %c0_i32_0 = arith.constant 0 : i32
    return %c0_i32, %arg1 : i32, i32
  }
  func.func @transform_5(%arg0: i32, %arg1: i32) -> (i32, i32) {
    %c0_i32 = arith.constant 0 : i32
    return %arg0, %arg1 : i32, i32
  }
}

</mosaic_0001>

<bundles_post_ra>
// kernel: tpu_custom_call.1
= control target key start
LH: loop header
LB: loop body
LE: loop exit
PB: predicated region body
PF: predicated region fallthrough
CT: control target
= control target key end

     0   :  { %10 = vsyncpa [#allocation3], 0  ;;  %s669_s0 = inlined_call_operand.hbm [shape: f32[16,128], index: 0, kind: input, shape index: {}]   ;;  %s670_s1 = inlined_call_operand.vmem [shape: f32[1,128], index: 1, kind: input, shape index: {}]   ;;  %s671_s2 = inlined_call_operand.vmem [shape: f32[1,128], index: 2, kind: input, shape index: {}]   ;;  %s672_s3 = inlined_call_operand.hbm [shape: bf16[128,384], index: 3, kind: input, shape index: {}]   ;;  %s673_s4 = inlined_call_operand.vmem [shape: f32[1,384], index: 4, kind: input, shape index: {}]   ;;  %s674_s5 = inlined_call_operand.hbm [shape: f32[16,384], index: 5, kind: output, shape index: {}]  }
   0x1   :  { %11 = vsyncpa [#allocation6], 0 }
   0x2   :  { %12 = vsyncpa [#allocation4], 0  ;;  %s572_s18 = smov [#allocation2]   ;;  %s500_s22 = scalar_lea.hbm %s669_s0, 256 }
   0x3   :  { %s18_s19 = sshll.u32 %s572_s18, 4  ;;  %p501_p0 = scmp.ne.s32.totalorder %s669_s0, %s500_s22  ;;  %s19_s19 = int_to_ptr.vmem [resolvable:$true] %s18_s19 }
   0x4   :  { %p504_p1 = scmp.lt.u32.totalorder %s500_s22, %s669_s0 }
   0x6   :  { %p506_p2 = pnand %p504_p1, %p501_p0 }
   0x8   :  { %509 = shalt.err (!%p506_p2)
}
   0x9   :  { %s510_s27 = scalar_lea.vmem %s19_s19, 256  ;;  %p515_p4 = scmp.lt.s32.totalorder %s19_s19, %s19_s19 }
   0xa   :  { %p511_p3 = scmp.ne.s32.totalorder %s19_s19, %s510_s27  ;;  %p516_p5 = scmp.lt.s32.totalorder %s510_s27, %s510_s27 }
   0xc   :  { %p517_p6 = por %p516_p5, %p515_p4 }
   0xe   :  { %p518_p7 = pnand %p517_p6, %p511_p3 }
  0x10   :  { %521 = shalt.err (!%p518_p7)
}
  0x11   :  { %s573_s28 = smov 128   ;;  %s574_s29 = smov 8  }
  0x12   :  { %24 = dma.hbm_to_vmem [thread:$0]  %s669_s0, 256, %s19_s19, [#allocation3], %s573_s28, %s573_s28, %s574_s29  }
  0x13   :  { %s575_s7 = smov [#allocation5]   ;;  %s522_s11 = scalar_lea.hbm %s672_s3, 3072 }
  0x14   :  { %s34_s8 = sshll.u32 %s575_s7, 4  ;;  %p523_p8 = scmp.ne.s32.totalorder %s672_s3, %s522_s11  ;;  %s35_s8 = int_to_ptr.vmem [resolvable:$true] %s34_s8 }
  0x15   :  { %p526_p9 = scmp.lt.u32.totalorder %s522_s11, %s672_s3 }
  0x17   :  { %p528_p10 = pnand %p526_p9, %p523_p8 }
  0x19   :  { %531 = shalt.err (!%p528_p10)
}
  0x1a   :  { %s532_s16 = scalar_lea.vmem %s35_s8, 3072  ;;  %p537_p12 = scmp.lt.s32.totalorder %s35_s8, %s35_s8 }
  0x1b   :  { %p533_p11 = scmp.ne.s32.totalorder %s35_s8, %s532_s16  ;;  %p538_p13 = scmp.lt.s32.totalorder %s532_s16, %s532_s16 }
  0x1d   :  { %p539_p0 = por %p538_p13, %p537_p12 }
  0x1f   :  { %p540_p1 = pnand %p539_p0, %p533_p11 }
  0x21   :  { %543 = shalt.err (!%p540_p1)
}
  0x22   :  { %s576_s0 = smov 192   ;;  %s577_s17 = smov 12  }
  0x23   :  { %40 = dma.hbm_to_vmem [thread:$0]  %s672_s3, 3072, %s35_s8, [#allocation6], %s576_s0, %s576_s0, %s577_s17  }
  0x24   :  { %566 = dma.done.wait [#allocation3], 256  }
  0x25   :  { %567 = vsyncadd [#allocation3], 4294967040 }
  0x26   :  { %568 = dma.done.wait [#allocation6], 3072  }
  0x27   :  { %569 = vsyncadd [#allocation6], 4294964224  ;;  %v50_v0 = vld [vmem:[#allocation2] sm:$0xff]  ;;  %v51_v1 = vld [vmem:[#allocation2 + $0x8] sm:$0xff]  ;;  %v578_v13 = vmov 0.0   ;;  %v579_v30 = vmov 0   ;;  %v142_v63 = vlaneseq }
  0x28   :  { %52 = vadd.xlane.f32.xlu0 %v50_v0  ;;  %v460_v10 = vld [vmem:[#allocation5 + $0x4] ss:$12 sps:$4 sm:$0xff]   ;;  %v462_v11 = vld [vmem:[#allocation5] ss:$12 sps:$4 sm:$0xff]   ;;  %v463_v12 = vld [vmem:[#allocation5 + $0x8] ss:$12 sps:$4 sm:$0xff]   ;;  %428 = vmatprep.subr.bf16.mxu1 %v578_v13 }
  0x29   :  { %285 = vmatprep.subr.bf16.mxu0 %v460_v10  ;;  %429 = vmatpush3.bf16.msra.mxu1 %v463_v12  ;;  %v464_v14 = vld [vmem:[#allocation5 + $0x1c] ss:$12 sps:$4 sm:$0xff]   ;;  %v466_v15 = vld [vmem:[#allocation5 + $0x18] ss:$12 sps:$4 sm:$0xff]   ;;  %v467_v16 = vld [vmem:[#allocation5 + $0x20] ss:$12 sps:$4 sm:$0xff]  }
  0x2a   :  { %286 = vmatpush1.bf16.msra.mxu0 %v462_v11  ;;  %430 = vmatprep.subr.bf16.mxu1 %v578_v13  ;;  %v468_v17 = vld [vmem:[#allocation5 + $0x34] ss:$12 sps:$4 sm:$0xff]   ;;  %v470_v18 = vld [vmem:[#allocation5 + $0x30] ss:$12 sps:$4 sm:$0xff]   ;;  %v471_v19 = vld [vmem:[#allocation5 + $0x38] ss:$12 sps:$4 sm:$0xff]  }
  0x2b   :  { %287 = vmatprep.subr.bf16.mxu0 %v464_v14  ;;  %v472_v20 = vld [vmem:[#allocation5 + $0x4c] ss:$12 sps:$4 sm:$0xff]   ;;  %v474_v21 = vld [vmem:[#allocation5 + $0x48] ss:$12 sps:$4 sm:$0xff]   ;;  %v475_v22 = vld [vmem:[#allocation5 + $0x50] ss:$12 sps:$4 sm:$0xff]   ;;  %317 = vmatprep.mubr.bf16.mxu0 %v579_v30 }
  0x2c   :  { %54 = vadd.xlane.f32.xlu0 %v51_v1  ;;  %v476_v23 = vld [vmem:[#allocation5 + $0x64] ss:$12 sps:$4 sm:$0xff]   ;;  %v478_v24 = vld [vmem:[#allocation5 + $0x60] ss:$12 sps:$4 sm:$0xff]   ;;  %v479_v25 = vld [vmem:[#allocation5 + $0x68] ss:$12 sps:$4 sm:$0xff]  }
  0x2d   :  { %431 = vmatpush3.bf16.msra.mxu1 %v467_v16  ;;  %v480_v26 = vld [vmem:[#allocation5 + $0x7c] ss:$12 sps:$4 sm:$0xff]   ;;  %v482_v27 = vld [vmem:[#allocation5 + $0x78] ss:$12 sps:$4 sm:$0xff]   ;;  %v483_v28 = vld [vmem:[#allocation5 + $0x80] ss:$12 sps:$4 sm:$0xff]  }
  0x2e   :  { %288 = vmatpush1.bf16.msra.mxu0 %v466_v15  ;;  %432 = vmatprep.subr.bf16.mxu1 %v578_v13  ;;  %v484_v29 = vld [vmem:[#allocation5 + $0x94] ss:$12 sps:$4 sm:$0xff]   ;;  %vm580_vm0 = vmmov 0   ;;  %v486_v31 = vld [vmem:[#allocation5 + $0x90] ss:$12 sps:$4 sm:$0xff]  }
  0x2f   :  { %289 = vmatprep.subr.bf16.mxu0 %v468_v17  ;;  %444 = vmatprep.mubr.msk.bf16.mxu1 %vm580_vm0, %v578_v13  ;;  %v487_v32 = vld [vmem:[#allocation5 + $0x98] ss:$12 sps:$4 sm:$0xff]   ;;  %v490_v34 = vld [vmem:[#allocation5 + $0xa8] ss:$12 sps:$4 sm:$0xff]   ;;  %v491_v35 = vld [vmem:[#allocation5 + $0xb0] ss:$12 sps:$4 sm:$0xff]  }
  0x30   :  { %v488_v33 = vld [vmem:[#allocation5 + $0xac] ss:$12 sps:$4 sm:$0xff]   ;;  %v393_v54 = vld [vmem:[%s670_s1] ss:$0 sm:$0xff] }
  0x31   :  { %433 = vmatpush3.bf16.msra.mxu1 %v471_v19  ;;  %v394_v58 = vld [vmem:[%s671_s2] ss:$0 sm:$0xff]  ;;  %s581_s2 = smov [#allocation7]  }
  0x32   :  { %290 = vmatpush1.bf16.msra.mxu0 %v470_v18  ;;  %434 = vmatprep.subr.bf16.mxu1 %v578_v13  ;;  %s380_s24 = sshll.u32 %s581_s2, 4  ;;  %s381_s24 = int_to_ptr.vmem [resolvable:$true] %s380_s24 }
  0x33   :  { %291 = vmatprep.subr.bf16.mxu0 %v472_v20  ;;  %p549_p3 = scmp.lt.s32.totalorder %s381_s24, %s381_s24 }
  0x35   :  { %435 = vmatpush3.bf16.msra.mxu1 %v475_v22 }
  0x36   :  { %292 = vmatpush1.bf16.msra.mxu0 %v474_v21  ;;  %436 = vmatprep.subr.bf16.mxu1 %v578_v13 }
  0x37   :  { %293 = vmatprep.subr.bf16.mxu0 %v476_v23 }
  0x39   :  { %437 = vmatpush3.bf16.msra.mxu1 %v479_v25 }
  0x3a   :  { %294 = vmatpush1.bf16.msra.mxu0 %v478_v24  ;;  %438 = vmatprep.subr.bf16.mxu1 %v578_v13 }
  0x3b   :  { %295 = vmatprep.subr.bf16.mxu0 %v480_v26 }
  0x3d   :  { %439 = vmatpush3.bf16.msra.mxu1 %v483_v28 }
  0x3e   :  { %296 = vmatpush1.bf16.msra.mxu0 %v482_v27  ;;  %440 = vmatprep.subr.bf16.mxu1 %v578_v13 }
  0x3f   :  { %297 = vmatprep.subr.bf16.mxu0 %v484_v29 }
  0x41   :  { %441 = vmatpush3.bf16.msra.mxu1 %v487_v32 }
  0x42   :  { %298 = vmatpush1.bf16.msra.mxu0 %v486_v31  ;;  %442 = vmatprep.subr.bf16.mxu1 %v578_v13 }
  0x43   :  { %299 = vmatprep.subr.bf16.mxu0 %v488_v33 }
  0x45   :  { %443 = vmatpush3.bf16.msra.mxu1 %v491_v35 }
  0x46   :  { %300 = vmatpush1.bf16.msra.mxu0 %v490_v34 }
  0xb5   :  { %v53_v2 = vpop.xlane.xlu0 %52 }
  0xb6   :  { %v57_v3 = vmul.f32 0.0078125, %v53_v2 }
  0xb8   :  { %v638_v4 = vsub.f32 %v50_v0, %v57_v3  ;;  %v143_v0 = vshrl.u32 %v142_v63, 7  ;;  %v140_v3 = vld [vmem:[%s673_s4] sm:$0x7]  ;;  %s544_s4 = scalar_lea.vmem %s381_s24, 768 }
  0xb9   :  { %v55_v5 = vpop.xlane.xlu0 %54  ;;  %p545_p2 = scmp.ne.s32.totalorder %s381_s24, %s544_s4  ;;  %p550_p4 = scmp.lt.s32.totalorder %s544_s4, %s544_s4 }
  0xba   :  { %v58_v6 = vmul.f32 0.0078125, %v55_v5  ;;  %v61_v7 = vmul.f32 %v638_v4, %v638_v4  ;;  %v152_v2 = vsub.s32 2, %v143_v0 }
  0xbb   :  { %p551_p5 = por %p550_p4, %p549_p3 }
  0xbc   :  { %v642_v8 = vsub.f32 %v51_v1, %v58_v6  ;;  %63 = vadd.xlane.f32.xlu1 %v61_v7  ;;  %v144_v1 = vsub.s32 0, %v143_v0  ;;  %v153_v6 = vrot.slane %v140_v3, %v152_v2 }
  0xbd   :  { %p552_p6 = pnand %p551_p5, %p545_p2 }
  0xbe   :  { %v62_v9 = vmul.f32 %v642_v8, %v642_v8  ;;  %v145_v5 = vrot.slane %v140_v3, %v144_v1 }
  0xc0   :  { %65 = vadd.xlane.f32.xlu1 %v62_v9 }
 0x149   :  { %v64_v36 = vpop.xlane.xlu1 %63 }
 0x14a   :  { %v67_v37 = vmul.f32 0.007874016, %v64_v36 }
 0x14c   :  { %492 = vrsqrt.f32 %v67_v37  ;;  %vm71_vm1 = vcmp.eq.f32.partialorder %v67_v37, inf  ;;  %v74_v42 = vand.u32 2147483648, %v67_v37  ;;  %vm73_vm2 = vcmp.eq.f32.partialorder %v67_v37, 0.0 }
 0x14d   :  { %v66_v38 = vpop.xlane.xlu1 %65 }
 0x14e   :  { %v68_v39 = vmul.f32 0.007874016, %v66_v38 }
 0x150   :  { %494 = vrsqrt.f32 %v68_v39  ;;  %vm78_vm3 = vcmp.eq.f32.partialorder %v68_v39, inf  ;;  %v81_v48 = vand.u32 2147483648, %v68_v39  ;;  %vm80_vm4 = vcmp.eq.f32.partialorder %v68_v39, 0.0 }
 0x156   :  { %v493_v40 = vpop.eup %492 }
 0x157   :  { %v70_v41 = vmul.f32 %v493_v40, %v67_v37 }
 0x159   :  { %v72_v43 = vsel %vm71_vm1, %v67_v37, %v70_v41 }
 0x15a   :  { %v495_v44 = vpop.eup %494  ;;  %v75_v45 = vsel %vm73_vm2, %v74_v42, %v72_v43 }
 0x15b   :  { %v83_v46 = vadd.f32 1e-06, %v75_v45  ;;  %v77_v47 = vmul.f32 %v495_v44, %v68_v39 }
 0x15d   :  { %v79_v49 = vsel %vm78_vm3, %v68_v39, %v77_v47  ;;  %496 = vrcp.f32 %v83_v46 }
 0x15e   :  { %v82_v50 = vsel %vm80_vm4, %v81_v48, %v79_v49 }
 0x15f   :  { %v84_v51 = vadd.f32 1e-06, %v82_v50 }
 0x161   :  { %498 = vrcp.f32 %v84_v51 }
 0x167   :  { %v497_v52 = vpop.eup %496 }
 0x168   :  { %v88_v53 = vmul.f32 %v497_v52, %v638_v4  ;;  %v148_v4 = vsub.s32 1, %v143_v0 }
 0x16a   :  { %v96_v57 = vmul.f32 %v393_v54, %v88_v53  ;;  %v149_v7 = vrot.slane %v140_v3, %v148_v4 }
 0x16b   :  { %v499_v55 = vpop.eup %498 }
 0x16c   :  { %v89_v56 = vmul.f32 %v499_v55, %v642_v8  ;;  %v105_v60 = vadd.f32 %v394_v58, %v96_v57 }
 0x16e   :  { %v97_v59 = vmul.f32 %v393_v54, %v89_v56 }
 0x170   :  { %v106_v61 = vadd.f32 %v394_v58, %v97_v59 }
 0x172   :  { %v107_v62 = vpack.c.bf16 %v106_v61, %v105_v60 }
 0x174   :  { %318 = vmatmul.mubr.bf16.vlgmr.msra.gmra.mrb[0].mxu0 %v107_v62  ;;  %445 = vmatmul.mubr.bf16.vlgmr.msra.gmra.mrb[0].mxu1 %v107_v62 }
 0x247   :  { %v319_v8 = vpop.f32.mrb[0].mxu0  ;;  %v362_v9 = vpop.f32.mrb[0].mxu1 }
 0x248   :  { %v320_v10 = vadd.f32 %v319_v8, %v145_v5  ;;  %v363_v11 = vadd.f32 %v362_v9, %v153_v6  ;;  %v321_v12 = vpop.f32.mrb[1].mxu0  ;;  %v446_v13 = vpop.f32.mrb[1].mxu1 }
 0x249   :  { %v322_v14 = vadd.f32 %v321_v12, %v149_v7  ;;  %v323_v15 = vpop.f32.mrb[2].mxu0  ;;  %v365_v16 = vpop.f32.mrb[2].mxu1 }
 0x24a   :  { %369 = vst [vmem:[#allocation7] sm:$0xff] %v320_v10  ;;  %371 = vst [vmem:[#allocation7 + $0x10] sm:$0xff] %v363_v11  ;;  %v324_v17 = vadd.f32 %v323_v15, %v145_v5  ;;  %v366_v18 = vadd.f32 %v365_v16, %v153_v6  ;;  %v325_v19 = vpop.f32.mrb[3].mxu0  ;;  %v447_v20 = vpop.f32.mrb[3].mxu1 }
 0x24b   :  { %370 = vst [vmem:[#allocation7 + $0x8] sm:$0xff] %v322_v14  ;;  %v326_v21 = vadd.f32 %v325_v19, %v149_v7 }
 0x24c   :  { %372 = vst [vmem:[#allocation7 + $0x18] sm:$0xff] %v324_v17  ;;  %374 = vst [vmem:[#allocation7 + $0x28] sm:$0xff] %v366_v18 }
 0x24d   :  { %373 = vst [vmem:[#allocation7 + $0x20] sm:$0xff] %v326_v21 }
 0x24e   :  { %555 = shalt.err (!%p552_p6)
}
 0x24f   :  { %s556_s27 = scalar_lea.hbm %s674_s5, 768 }
 0x250   :  { %p557_p7 = scmp.ne.s32.totalorder %s674_s5, %s556_s27  ;;  %p560_p8 = scmp.lt.u32.totalorder %s556_s27, %s674_s5 }
 0x252   :  { %p562_p9 = pnand %p560_p8, %p557_p7 }
 0x254   :  { %565 = shalt.err (!%p562_p9)
}
 0x255   :  { %s582_s7 = smov 384   ;;  %s583_s8 = smov 24  }
 0x256   :  { %386 = dma.vmem_to_hbm [thread:$0]  %s381_s24, 768, %s674_s5, [#allocation4], %s582_s7, %s582_s7, %s583_s8  }
 0x257   :  { %570 = dma.done.wait [#allocation4], 768  }
 0x258   :  { %571 = vsyncadd [#allocation4], 4294966528 }
 0x259   :  { %390 = vsyncpa [#allocation3], 1 }
 0x25a   :  { %391 = vsyncpa [#allocation6], 1 }
 0x25b   :  { %392 = vsyncpa [#allocation4], 1 }

</bundles_post_ra>
